<compile_context>
chip_gen: v7x
topology: tpu7x:2x2x1
jax: 0.10.0
libtpu: 0.0.40
codegen_flags: <defaults>
</compile_context>

<pallas_src>
import functools
import math

import numpy as np
import jax
import jax.numpy as jnp
from jax.experimental import pallas as pl
from jax.experimental.pallas import tpu as pltpu

BN_EPS = 1e-5


# ----------------------------------------------------------------------------
# Fused matmul kernel:  OUT_bf16 = post_act( X_bf16 @ W_bf16 )
#   X: (M, K) bf16, W: (K, N) bf16 with BN scale pre-folded, OUT: (M, N) bf16.
# Grid = (M tiles, N tiles, K tiles).  The f32 accumulator lives in a VMEM
# scratch; it is zeroed at k == 0 and the activation epilogue + bf16 store run
# once under the last-k pl.when.
# ----------------------------------------------------------------------------
def _mm_kernel(x_ref, w_ref, o_ref, acc_ref, *, post_act):
    k = pl.program_id(2)

    @pl.when(k == 0)
    def _():
        acc_ref[...] = jnp.zeros_like(acc_ref)

    acc_ref[...] += jnp.dot(x_ref[...], w_ref[...],
                            preferred_element_type=jnp.float32)

    @pl.when(k == pl.num_programs(2) - 1)
    def _():
        y = acc_ref[...]
        if post_act == "relu":
            y = jnp.maximum(y, 0.0)
        elif post_act == "lrelu":
            y = jnp.where(y > 0, y, 0.2 * y)
        elif post_act == "tanh":
            y = jnp.tanh(y)
        o_ref[...] = y.astype(o_ref.dtype)


def _largest_divisor(dim, candidates):
    for c in candidates:
        if c <= dim and dim % c == 0:
            return c
    return dim  # full dimension is always a legal block extent


def matmul_fused(x_bf16, w_bf16, *, post_act="none"):
    """x: (M, K) bf16, w: (K, N) bf16 (N % 128 == 0) -> (M, N) bf16."""
    M, K = x_bf16.shape
    K2, N = w_bf16.shape
    assert K == K2 and N % 128 == 0, (x_bf16.shape, w_bf16.shape)

    tm = _largest_divisor(M, (256, 128, 64, 32, 16, 8))
    tn = _largest_divisor(N, (256, 128))
    num_i, num_j = M // tm, N // tn

    # Weight-resident mode: single N tile + small weight + many M tiles ->
    # tk = K so the W block index is constant over the whole grid and the
    # weight is DMA'd exactly once (instead of once per M tile).
    resident = (num_j == 1 and K * tn * 2 <= 2 * 1024 * 1024 and num_i >= 4)
    if resident or K <= 512:
        tk = K
    else:
        # Tiled K: guarantees >= 2 K steps on the big-K layers so the K axis
        # double-buffers (DMA/compute overlap), per review.
        tk = _largest_divisor(K, (1024, 512, 256, 128))

    kern = functools.partial(_mm_kernel, post_act=post_act)
    return pl.pallas_call(
        kern,
        out_shape=jax.ShapeDtypeStruct((M, N), jnp.bfloat16),
        grid_spec=pltpu.PrefetchScalarGridSpec(
            num_scalar_prefetch=0,
            grid=(M // tm, N // tn, K // tk),
            in_specs=[
                pl.BlockSpec((tm, tk), lambda i, j, k: (i, k)),
                pl.BlockSpec((tk, tn), lambda i, j, k: (k, j)),
            ],
            out_specs=pl.BlockSpec((tm, tn), lambda i, j, k: (i, j)),
            scratch_shapes=[pltpu.VMEM((tm, tn), jnp.float32)],
        ),
        compiler_params=pltpu.CompilerParams(
            dimension_semantics=("parallel", "parallel", "arbitrary"),
        ),
    )(x_bf16, w_bf16)


# ----------------------------------------------------------------------------
# NHWC im2col glue (bf16) + conv / conv-transpose wrappers.
# ----------------------------------------------------------------------------
def _im2col_nhwc(x, kh, kw, stride, pad):
    """x: (N, H, W, C) -> (N*OH*OW, kh*kw*C), feature order (ky, kx, c)."""
    n, h, w, c = x.shape
    xp = jnp.pad(x, ((0, 0), (pad, pad), (pad, pad), (0, 0)))
    oh = (h + 2 * pad - kh) // stride + 1
    ow = (w + 2 * pad - kw) // stride + 1
    cols = []
    for i in range(kh):
        for j in range(kw):
            cols.append(xp[:, i:i + stride * oh:stride, j:j + stride * ow:stride, :])
    patches = jnp.concatenate(cols, axis=-1)          # (N, OH, OW, kh*kw*C)
    return patches.reshape(n * oh * ow, kh * kw * c), oh, ow


def conv2d_fused(x, w, scale, *, stride, pad, post_act="none"):
    """PyTorch Conv2d (no bias), NHWC activations. w: (Cout, Cin, KH, KW)."""
    cout, cin, kh, kw = w.shape
    n = x.shape[0]
    X, oh, ow = _im2col_nhwc(x.astype(jnp.bfloat16), kh, kw, stride, pad)
    Wm = jnp.transpose(w, (2, 3, 1, 0)).reshape(kh * kw * cin, cout)
    Wm = Wm * scale[None, :]                          # fold BN scale (bias = 0)
    npad = (-cout) % 128
    if npad:
        Wm = jnp.pad(Wm, ((0, 0), (0, npad)))         # lane-dense output
    Y = matmul_fused(X, Wm.astype(jnp.bfloat16), post_act=post_act)
    if npad:
        Y = Y[:, :cout]
    return Y.reshape(n, oh, ow, cout)


def _deconv_weight_matrix(w, scale):
    """ConvTranspose2d(k=4,s=2,p=1) weight (Cin,Cout,4,4) -> sub-pixel matrix
    of shape (9*Cin, 4*Cout): one 3x3 stride-1 conv over the pad-1 input whose
    4*Cout columns are the 4 output phases (py, px)."""
    cin, cout = w.shape[:2]
    Wm = jnp.zeros((9, cin, 4, cout), dtype=jnp.float32)
    for py in range(2):
        for px in range(2):
            p = py * 2 + px
            for a in range(2):
                for b in range(2):
                    dy, dx = py + a, px + b
                    ky = (3 - 2 * a) if py == 0 else (2 - 2 * a)
                    kx = (3 - 2 * b) if px == 0 else (2 - 2 * b)
                    Wm = Wm.at[dy * 3 + dx, :, p, :].set(w[:, :, ky, kx])
    Wm = Wm * scale[None, None, None, :]              # fold BN scale (bias = 0)
    return Wm.reshape(9 * cin, 4 * cout)


def conv_transpose2d_fused(x, w, scale, *, post_act="none"):
    """PyTorch ConvTranspose2d(4, stride=2, pad=1, no bias), NHWC activations.
    Sub-pixel decomposition (no zero-dilation): one 3x3 stride-1 conv produces
    the 4 output phases (lane-dense columns) followed by a pixel shuffle.
    The input is assumed already activated (zero padding stays correct)."""
    cin, cout, kh, kw = w.shape
    n, h, wd, c = x.shape
    X, _, _ = _im2col_nhwc(x.astype(jnp.bfloat16), 3, 3, 1, 1)   # (n*h*wd, 9*Cin)
    Wm = _deconv_weight_matrix(w, scale)              # (9*Cin, 4*Cout)
    nphase = 4 * cout
    npad = (-nphase) % 128
    if npad:
        Wm = jnp.pad(Wm, ((0, 0), (0, npad)))
    Y = matmul_fused(X, Wm.astype(jnp.bfloat16), post_act=post_act)
    if npad:
        Y = Y[:, :nphase]
    Y = Y.reshape(n, h, wd, 2, 2, cout)               # (..., py, px, cout)
    Y = Y.transpose(0, 1, 3, 2, 4, 5).reshape(n, 2 * h, 2 * wd, cout)
    return Y


def latent_proj_fused(noise, w, scale):
    """ConvTranspose2d(latent, 512, 4, 1, 0) on a 1x1 input + BN + ReLU.
    noise: (B, L, 1, 1); w: (L, 512, 4, 4) -> NHWC (B, 4, 4, 512), ReLU'd."""
    b, l = noise.shape[:2]
    cout = w.shape[1]
    X = noise.reshape(b, l).astype(jnp.bfloat16)
    Wm = jnp.transpose(w, (0, 2, 3, 1)).reshape(l, 16 * cout)  # cols (ky, kx, co)
    Wm = Wm * jnp.tile(scale, 16)[None, :]
    Y = matmul_fused(X, Wm.astype(jnp.bfloat16), post_act="relu")
    return Y.reshape(b, 4, 4, cout)


# ----------------------------------------------------------------------------
# Parameters (deterministic init, shapes straight from the module __init__).
# ----------------------------------------------------------------------------
def init_params(key, latent_dim, condition_channels, img_channels):
    def w(key, shape):
        return 0.05 * jax.random.normal(key, shape, dtype=jnp.float32)

    keys = jax.random.split(key, 11)
    return {
        "lp_w": w(keys[0], (latent_dim, 512, 4, 4)),          # ConvTranspose2d
        "e1_w": w(keys[1], (64, condition_channels, 4, 4)),   # Conv2d
        "e2_w": w(keys[2], (128, 64, 4, 4)),
        "e3_w": w(keys[3], (256, 128, 4, 4)),
        "e4_w": w(keys[4], (512, 256, 4, 4)),
        "e5_w": w(keys[5], (512, 512, 4, 4)),
        "d1_w": w(keys[6], (1024, 512, 4, 4)),                # ConvTranspose2d
        "d2_w": w(keys[7], (1024, 256, 4, 4)),
        "d3_w": w(keys[8], (512, 128, 4, 4)),
        "d4_w": w(keys[9], (256, 64, 4, 4)),
        "d5_w": w(keys[10], (128, img_channels, 4, 4)),
    }


def _bn_scale(n):
    # eval-mode BN with gamma=1, beta=0, running_mean=0, running_var=1
    return jnp.full((n,), 1.0 / math.sqrt(1.0 + BN_EPS), dtype=jnp.float32)


def _ones(n):
    return jnp.ones((n,), dtype=jnp.float32)


# ----------------------------------------------------------------------------
# Forward pass (mirrors Generator.forward); NHWC + bf16 inside, NCHW f32 at
# the boundary.  Activations are fused into the producer's epilogue; the skip
# tensors (stored LeakyReLU'd) get relu(lrelu(x)) == relu(x) applied once,
# fused into the bf16 skip concat.
# ----------------------------------------------------------------------------
def generator_forward(params, condition, noise, img_channels):
    x = jnp.transpose(condition, (0, 2, 3, 1)).astype(jnp.bfloat16)  # NCHW -> NHWC

    latent_feat = latent_proj_fused(noise, params["lp_w"], _bn_scale(512))  # ReLU'd

    # Encoders: LeakyReLU(0.2) of the *next* layer is fused here as post_act.
    e1 = conv2d_fused(x, params["e1_w"], _ones(64), stride=2, pad=1,
                      post_act="lrelu")
    e2 = conv2d_fused(e1, params["e2_w"], _bn_scale(128), stride=2, pad=1,
                      post_act="lrelu")
    e3 = conv2d_fused(e2, params["e3_w"], _bn_scale(256), stride=2, pad=1,
                      post_act="lrelu")
    e4 = conv2d_fused(e3, params["e4_w"], _bn_scale(512), stride=2, pad=1,
                      post_act="lrelu")
    # e5 is only consumed by dec1 (which applies ReLU) -> store it ReLU'd.
    e5 = conv2d_fused(e4, params["e5_w"], _bn_scale(512), stride=2, pad=1,
                      post_act="relu")

    combined = jnp.concatenate([e5, latent_feat], axis=-1)   # both already ReLU'd

    # Decoders: the next decoder's ReLU is fused as post_act; Dropout is
    # eval-mode identity.  Skip parts use relu(lrelu(x)) == relu(x).
    d1 = conv_transpose2d_fused(combined, params["d1_w"], _bn_scale(512),
                                post_act="relu")
    d1 = jnp.concatenate([d1, jnp.maximum(e4, 0)], axis=-1)
    d2 = conv_transpose2d_fused(d1, params["d2_w"], _bn_scale(256),
                                post_act="relu")
    d2 = jnp.concatenate([d2, jnp.maximum(e3, 0)], axis=-1)
    d3 = conv_transpose2d_fused(d2, params["d3_w"], _bn_scale(128),
                                post_act="relu")
    d3 = jnp.concatenate([d3, jnp.maximum(e2, 0)], axis=-1)
    d4 = conv_transpose2d_fused(d3, params["d4_w"], _bn_scale(64),
                                post_act="relu")
    d4 = jnp.concatenate([d4, jnp.maximum(e1, 0)], axis=-1)
    out = conv_transpose2d_fused(d4, params["d5_w"], _ones(img_channels),
                                 post_act="tanh")

    return jnp.transpose(out, (0, 3, 1, 2)).astype(jnp.float32)  # NHWC -> NCHW


# ----------------------------------------------------------------------------
# Numerical self-test against direct PyTorch-semantics references.
# ----------------------------------------------------------------------------
def _ref_conv2d(x, w, stride, pad):
    """NHWC x, (Cout, Cin, KH, KW) w; direct gather-form Conv2d."""
    x = np.asarray(x, np.float64)
    w = np.asarray(w, np.float64)
    n, h, wd, cin = x.shape
    cout, _, kh, kw = w.shape
    oh = (h + 2 * pad - kh) // stride + 1
    ow = (wd + 2 * pad - kw) // stride + 1
    out = np.zeros((n, oh, ow, cout), np.float64)
    for oy in range(oh):
        for ox in range(ow):
            for ky in range(kh):
                for kx in range(kw):
                    iy = oy * stride - pad + ky
                    ix = ox * stride - pad + kx
                    if 0 <= iy < h and 0 <= ix < wd:
                        out[:, oy, ox, :] += x[:, iy, ix, :] @ w[:, :, ky, kx].T
    return out


def _ref_conv_transpose2d(x, w, stride, pad):
    """NHWC x, (Cin, Cout, KH, KW) w; direct scatter-form ConvTranspose2d."""
    x = np.asarray(x, np.float64)
    w = np.asarray(w, np.float64)
    n, h, wd, cin = x.shape
    _, cout, kh, kw = w.shape
    oh = (h - 1) * stride - 2 * pad + kh
    ow = (wd - 1) * stride - 2 * pad + kw
    out = np.zeros((n, oh, ow, cout), np.float64)
    for iy in range(h):
        for ix in range(wd):
            contrib = np.einsum("nc,cokl->nklo", x[:, iy, ix, :], w)
            for ky in range(kh):
                for kx in range(kw):
                    oy = iy * stride - pad + ky
                    ox = ix * stride - pad + kx
                    if 0 <= oy < oh and 0 <= ox < ow:
                        out[:, oy, ox, :] += contrib[:, ky, kx, :]
    return out


def _self_test():
    key = jax.random.PRNGKey(42)
    k1, k2, k3, k4 = jax.random.split(key, 4)

    xc = jax.random.normal(k1, (1, 8, 8, 8), jnp.float32)
    wc = 0.05 * jax.random.normal(k2, (16, 8, 4, 4), jnp.float32)
    got = conv2d_fused(xc, wc, _ones(16), stride=2, pad=1)
    got = np.asarray(got.astype(jnp.float32), np.float64)
    ref = _ref_conv2d(xc, wc, 2, 1)
    assert np.max(np.abs(got - ref)) < 0.05, "conv2d_fused mismatch"

    xt = jax.random.normal(k3, (1, 8, 8, 8), jnp.float32)
    wt = 0.05 * jax.random.normal(k4, (8, 8, 4, 4), jnp.float32)
    got = conv_transpose2d_fused(xt, wt, _ones(8))
    got = np.asarray(got.astype(jnp.float32), np.float64)
    ref = _ref_conv_transpose2d(xt, wt, 2, 1)
    assert np.max(np.abs(got - ref)) < 0.05, "conv_transpose2d_fused mismatch"


# ----------------------------------------------------------------------------
if __name__ == "__main__":
    _self_test()

    LATENT_DIM = 8
    CONDITION_CHANNELS = 3
    IMG_CHANNELS = 3
    BATCH = 2
    # The architecture requires a 128x128 condition so that the 5x stride-2
    # encoder reaches 4x4 (matching the 4x4 latent map).
    H = W = 128

    key = jax.random.PRNGKey(0)
    k_params, k_cond, k_noise = jax.random.split(key, 3)

    params = init_params(k_params, LATENT_DIM, CONDITION_CHANNELS, IMG_CHANNELS)
    condition = jax.random.normal(k_cond, (BATCH, CONDITION_CHANNELS, H, W),
                                  dtype=jnp.float32)
    noise = jax.random.normal(k_noise, (BATCH, LATENT_DIM, 1, 1), dtype=jnp.float32)

    fwd = jax.jit(functools.partial(generator_forward, img_channels=IMG_CHANNELS))
    out = fwd(params, condition, noise)
    out = jax.block_until_ready(out)

    assert out.shape == (BATCH, IMG_CHANNELS, H, W), out.shape
    assert out.dtype == jnp.float32
    assert bool(jnp.all(jnp.isfinite(out)))
    print("KERNEL_OK")
</pallas_src>

<mosaic_0001>
module attributes {stable_mosaic.version = 11 : i64} {
  func.func @_mm_kernel(%arg0: i32, %arg1: i32, %arg2: i32, %arg3: memref<16x128xbf16, #tpu.memory_space<vmem>>, %arg4: memref<128x128xbf16, #tpu.memory_space<vmem>>, %arg5: memref<16x128xbf16, #tpu.memory_space<vmem>>, %arg6: memref<16x128xf32, #tpu.memory_space<vmem>>) attributes {dimension_semantics = [#tpu.dimension_semantics<parallel>, #tpu.dimension_semantics<parallel>, #tpu.dimension_semantics<arbitrary>], iteration_bounds = array<i64: 1, 1, 1>, scalar_prefetch = 0 : i64, scratch_operands = 1 : i64, tpu.core_type = #tpu.core_type<tc>, window_params = [{transform_indices = @transform_0, window_bounds = array<i64: 16, 128>}, {transform_indices = @transform_1, window_bounds = array<i64: 128, 128>}, {transform_indices = @transform_2, window_bounds = array<i64: 16, 128>}]} {
    %c0_i32 = arith.constant 0 : i32
    %0 = arith.cmpi eq, %arg2, %c0_i32 : i32
    %1 = arith.extui %0 : i1 to i32
    %c0_i32_0 = arith.constant 0 : i32
    %2 = arith.cmpi ne, %1, %c0_i32_0 : i32
    scf.if %2 {
      %cst_10 = arith.constant 0.000000e+00 : f32
      %12 = vector.broadcast %cst_10 : f32 to vector<16x128xf32>
      %c0_11 = arith.constant 0 : index
      %c0_12 = arith.constant 0 : index
      %13 = vector.load %arg6[%c0_11, %c0_12] : memref<16x128xf32, #tpu.memory_space<vmem>>, vector<16x128xf32>
      tpu.vector_store %arg6[%c0_11, %c0_12], %12 {strides = array<i32>} : memref<16x128xf32, #tpu.memory_space<vmem>>, vector<16x128xf32>,
    } else {
    }
    %c0 = arith.constant 0 : index
    %c0_1 = arith.constant 0 : index
    %3 = vector.load %arg6[%c0, %c0_1] : memref<16x128xf32, #tpu.memory_space<vmem>>, vector<16x128xf32>
    %c0_2 = arith.constant 0 : index
    %c0_3 = arith.constant 0 : index
    %4 = vector.load %arg3[%c0_2, %c0_3] : memref<16x128xbf16, #tpu.memory_space<vmem>>, vector<16x128xbf16>
    %c0_4 = arith.constant 0 : index
    %c0_5 = arith.constant 0 : index
    %5 = vector.load %arg4[%c0_4, %c0_5] : memref<128x128xbf16, #tpu.memory_space<vmem>>, vector<128x128xbf16>
    %cst = arith.constant dense<0.000000e+00> : vector<16x128xf32>
    %6 = tpu.matmul %4, %5, %cst {dimension_numbers = #tpu.dot_dimension_numbers<[1], [0], [0], [1], [0, 0, 1, 1], [], []>} : vector<16x128xbf16>, vector<128x128xbf16>, vector<16x128xf32> -> vector<16x128xf32>
    %7 = arith.addf %3, %6 : vector<16x128xf32>
    %c0_6 = arith.constant 0 : index
    %c0_7 = arith.constant 0 : index
    %8 = vector.load %arg6[%c0_6, %c0_7] : memref<16x128xf32, #tpu.memory_space<vmem>>, vector<16x128xf32>
    tpu.vector_store %arg6[%c0_6, %c0_7], %7 {strides = array<i32>} : memref<16x128xf32, #tpu.memory_space<vmem>>, vector<16x128xf32>,
    %c0_i32_8 = arith.constant 0 : i32
    %9 = arith.cmpi eq, %arg2, %c0_i32_8 : i32
    %10 = arith.extui %9 : i1 to i32
    %c0_i32_9 = arith.constant 0 : i32
    %11 = arith.cmpi ne, %10, %c0_i32_9 : i32
    scf.if %11 {
      %c0_10 = arith.constant 0 : index
      %c0_11 = arith.constant 0 : index
      %12 = vector.load %arg6[%c0_10, %c0_11] : memref<16x128xf32, #tpu.memory_space<vmem>>, vector<16x128xf32>
      %13 = arith.truncf %12 : vector<16x128xf32> to vector<16x128xbf16>
      %c0_12 = arith.constant 0 : index
      %c0_13 = arith.constant 0 : index
      %14 = vector.load %arg5[%c0_12, %c0_13] : memref<16x128xbf16, #tpu.memory_space<vmem>>, vector<16x128xbf16>
      tpu.vector_store %arg5[%c0_12, %c0_13], %13 {strides = array<i32>} : memref<16x128xbf16, #tpu.memory_space<vmem>>, vector<16x128xbf16>,
    } else {
    }
    return
  }
  func.func @transform_0(%arg0: i32, %arg1: i32, %arg2: i32) -> (i32, i32) {
    %c0_i32 = arith.constant 0 : i32
    return %arg0, %arg2 : i32, i32
  }
  func.func @transform_1(%arg0: i32, %arg1: i32, %arg2: i32) -> (i32, i32) {
    %c0_i32 = arith.constant 0 : i32
    return %arg2, %arg1 : i32, i32
  }
  func.func @transform_2(%arg0: i32, %arg1: i32, %arg2: i32) -> (i32, i32) {
    %c0_i32 = arith.constant 0 : i32
    return %arg0, %arg1 : i32, i32
  }
}

</mosaic_0001>

<bundles_post_ra>
// kernel: tpu_custom_call.1
= control target key start
LH: loop header
LB: loop body
LE: loop exit
PB: predicated region body
PF: predicated region fallthrough
CT: control target
= control target key end

     0   :  { %7 = vsyncpa [#allocation4], 0  ;;  %s401_s0 = inlined_call_operand.hbm [shape: bf16[16,128], index: 0, kind: input, shape index: {}]   ;;  %s402_s1 = inlined_call_operand.hbm [shape: bf16[128,128], index: 1, kind: input, shape index: {}]   ;;  %s403_s2 = inlined_call_operand.hbm [shape: bf16[16,128], index: 2, kind: output, shape index: {}]  }
   0x1   :  { %8 = vsyncpa [#allocation7], 0 }
   0x2   :  { %9 = vsyncpa [#allocation5], 0  ;;  %s334_s9 = smov [#allocation3]   ;;  %s262_s13 = scalar_lea.hbm %s401_s0, 128 }
   0x3   :  { %s15_s10 = sshll.u32 %s334_s9, 4  ;;  %p263_p0 = scmp.ne.s32.totalorder %s401_s0, %s262_s13  ;;  %s16_s10 = int_to_ptr.vmem [resolvable:$true] %s15_s10 }
   0x4   :  { %p266_p1 = scmp.lt.u32.totalorder %s262_s13, %s401_s0 }
   0x6   :  { %p268_p2 = pnand %p266_p1, %p263_p0 }
   0x8   :  { %271 = shalt.err (!%p268_p2)
}
   0x9   :  { %s272_s18 = scalar_lea.vmem %s16_s10, 128  ;;  %p277_p4 = scmp.lt.s32.totalorder %s16_s10, %s16_s10 }
   0xa   :  { %p273_p3 = scmp.ne.s32.totalorder %s16_s10, %s272_s18  ;;  %p278_p5 = scmp.lt.s32.totalorder %s272_s18, %s272_s18 }
   0xc   :  { %p279_p6 = por %p278_p5, %p277_p4 }
   0xe   :  { %p280_p7 = pnand %p279_p6, %p273_p3 }
  0x10   :  { %283 = shalt.err (!%p280_p7)
}
  0x11   :  { %s335_s19 = smov 64   ;;  %s336_s20 = smov 4  }
  0x12   :  { %21 = dma.hbm_to_vmem [thread:$0]  %s401_s0, 128, %s16_s10, [#allocation4], %s335_s19, %s335_s19, %s336_s20  }
  0x13   :  { %s337_s23 = smov [#allocation6]   ;;  %s284_s27 = scalar_lea.hbm %s402_s1, 1024 }
  0x14   :  { %s27_s24 = sshll.u32 %s337_s23, 4  ;;  %p285_p8 = scmp.ne.s32.totalorder %s402_s1, %s284_s27  ;;  %s28_s24 = int_to_ptr.vmem [resolvable:$true] %s27_s24 }
  0x15   :  { %p288_p9 = scmp.lt.u32.totalorder %s284_s27, %s402_s1 }
  0x17   :  { %p290_p10 = pnand %p288_p9, %p285_p8 }
  0x19   :  { %293 = shalt.err (!%p290_p10)
}
  0x1a   :  { %s294_s4 = scalar_lea.vmem %s28_s24, 1024  ;;  %p299_p12 = scmp.lt.s32.totalorder %s28_s24, %s28_s24 }
  0x1b   :  { %p295_p11 = scmp.ne.s32.totalorder %s28_s24, %s294_s4  ;;  %p300_p13 = scmp.lt.s32.totalorder %s294_s4, %s294_s4 }
  0x1d   :  { %p301_p0 = por %p300_p13, %p299_p12 }
  0x1f   :  { %p302_p1 = pnand %p301_p0, %p295_p11 }
  0x21   :  { %305 = shalt.err (!%p302_p1)
}
  0x22   :  { %33 = dma.hbm_to_vmem [thread:$0]  %s402_s1, 1024, %s28_s24, [#allocation7], %s335_s19, %s335_s19, %s336_s20  }
  0x23   :  { %328 = dma.done.wait [#allocation4], 128  }
  0x24   :  { %329 = vsyncadd [#allocation4], 4294967168 }
  0x25   :  { %330 = dma.done.wait [#allocation7], 1024  }
  0x26   :  { %331 = vsyncadd [#allocation7], 4294966272  ;;  %v338_v0 = vmov 0.0   ;;  %vm339_vm0 = vmmov 0   ;;  %v253_v1 = vld [vmem:[#allocation6] sm:$0xff]   ;;  %v254_v2 = vld [vmem:[#allocation6 + $0x8] sm:$0xff]  }
  0x27   :  { %226 = vmatprep.subr.bf16.mxu0 %v338_v0  ;;  %242 = vmatprep.mubr.msk.bf16.mxu0 %vm339_vm0, %v338_v0  ;;  %v255_v3 = vld [vmem:[#allocation6 + $0x10] sm:$0xff]   ;;  %v256_v4 = vld [vmem:[#allocation6 + $0x18] sm:$0xff]   ;;  %v257_v5 = vld [vmem:[#allocation6 + $0x20] sm:$0xff]   ;;  %s340_s1 = smov [#allocation8]  }
  0x28   :  { %227 = vmatpush3.bf16.msra.mxu0 %v253_v1  ;;  %v258_v6 = vld [vmem:[#allocation6 + $0x28] sm:$0xff]   ;;  %v259_v7 = vld [vmem:[#allocation6 + $0x30] sm:$0xff]   ;;  %v260_v8 = vld [vmem:[#allocation6 + $0x38] sm:$0xff]   ;;  %s186_s6 = sshll.u32 %s340_s1, 4  ;;  %s187_s6 = int_to_ptr.vmem [resolvable:$true] %s186_s6 }
  0x29   :  { %228 = vmatprep.subr.bf16.mxu0 %v338_v0  ;;  %v261_v9 = vld [vmem:[#allocation3] sm:$0xff]   ;;  %s306_s7 = scalar_lea.vmem %s187_s6, 128  ;;  %p311_p3 = scmp.lt.s32.totalorder %s187_s6, %s187_s6 }
  0x2a   :  { %p307_p2 = scmp.ne.s32.totalorder %s187_s6, %s306_s7  ;;  %p312_p4 = scmp.lt.s32.totalorder %s306_s7, %s306_s7 }
  0x2c   :  { %229 = vmatpush3.bf16.msra.mxu0 %v254_v2  ;;  %p313_p5 = por %p312_p4, %p311_p3 }
  0x2d   :  { %230 = vmatprep.subr.bf16.mxu0 %v338_v0 }
  0x2e   :  { %p314_p6 = pnand %p313_p5, %p307_p2 }
  0x30   :  { %231 = vmatpush3.bf16.msra.mxu0 %v255_v3 }
  0x31   :  { %232 = vmatprep.subr.bf16.mxu0 %v338_v0 }
  0x34   :  { %233 = vmatpush3.bf16.msra.mxu0 %v256_v4 }
  0x35   :  { %234 = vmatprep.subr.bf16.mxu0 %v338_v0 }
  0x38   :  { %235 = vmatpush3.bf16.msra.mxu0 %v257_v5 }
  0x39   :  { %236 = vmatprep.subr.bf16.mxu0 %v338_v0 }
  0x3c   :  { %237 = vmatpush3.bf16.msra.mxu0 %v258_v6 }
  0x3d   :  { %238 = vmatprep.subr.bf16.mxu0 %v338_v0 }
  0x40   :  { %239 = vmatpush3.bf16.msra.mxu0 %v259_v7 }
  0x41   :  { %240 = vmatprep.subr.bf16.mxu0 %v338_v0 }
  0x44   :  { %241 = vmatpush3.bf16.msra.mxu0 %v260_v8 }
  0x47   :  { %243 = vmatmul.mubr.bf16.vlgmr.msra.gmra.mrb[0].mxu0 %v261_v9 }
 0x11a   :  { %v155_v10 = vpop.f32.mrb[0].mxu0 }
 0x11b   :  { %v244_v11 = vpop.f32.mrb[1].mxu0 }
 0x11c   :  { %v158_v12 = vpop.f32.mrb[2].mxu0 }
 0x11d   :  { %v215_v13 = vpack.c.bf16 %v158_v12, %v155_v10  ;;  %v245_v14 = vpop.f32.mrb[3].mxu0 }
 0x11f   :  { %216 = vst [vmem:[#allocation8] sm:$0xff] %v215_v13  }
 0x120   :  { %317 = shalt.err (!%p314_p6)
}
 0x121   :  { %s318_s10 = scalar_lea.hbm %s403_s2, 128 }
 0x122   :  { %p319_p7 = scmp.ne.s32.totalorder %s403_s2, %s318_s10  ;;  %p322_p8 = scmp.lt.u32.totalorder %s318_s10, %s403_s2 }
 0x124   :  { %p324_p9 = pnand %p322_p8, %p319_p7 }
 0x126   :  { %327 = shalt.err (!%p324_p9)
}
 0x127   :  { %192 = dma.vmem_to_hbm [thread:$0]  %s187_s6, 128, %s403_s2, [#allocation5], %s335_s19, %s335_s19, %s336_s20  }
 0x128   :  { %332 = dma.done.wait [#allocation5], 128  }
 0x129   :  { %333 = vsyncadd [#allocation5], 4294967168 }
 0x12a   :  { %196 = vsyncpa [#allocation4], 1 }
 0x12b   :  { %197 = vsyncpa [#allocation7], 1 }
 0x12c   :  { %198 = vsyncpa [#allocation5], 1 }

</bundles_post_ra>
